<compile_context>
chip_gen: v7x
topology: tpu7x:2x2x1
jax: 0.10.0
libtpu: 0.0.40
codegen_flags: <defaults>
</compile_context>

<pallas_src>
import functools

import jax
import jax.numpy as jnp
from jax.experimental import pallas as pl
from jax.experimental.pallas import tpu as pltpu


def _mse_weighted_kernel(pred_ref, gt_ref, w_ref, partial_ref):
    """pred/gt: (TR, L); w: (TR, 1); partial: (1, 1) per-tile sum of squares."""
    d = pred_ref[...].astype(jnp.float32) - gt_ref[...].astype(jnp.float32)
    d = d * w_ref[...].astype(jnp.float32)            # broadcast (TR, 1) over (TR, L)
    partial_ref[...] = jnp.sum(d * d).reshape(1, 1)


def _mse_kernel(pred_ref, gt_ref, partial_ref):
    """pred/gt: (TR, L); partial: (1, 1) per-tile sum of squares."""
    d = pred_ref[...].astype(jnp.float32) - gt_ref[...].astype(jnp.float32)
    partial_ref[...] = jnp.sum(d * d).reshape(1, 1)


def _pick_tile_rows(num_rows, row_bytes, num_streams):
    """Rows per tile: multiple of 8, <= 512, double-buffered tiles within ~8 MiB."""
    budget = 8 * 1024 * 1024
    max_tr = budget // (2 * num_streams * max(row_bytes, 1))
    max_tr = max(8, (max_tr // 8) * 8)
    rows_pad8 = pl.cdiv(num_rows, 8) * 8
    return int(min(512, max_tr, rows_pad8))


@functools.partial(jax.jit, static_argnames=("use_target_weight",))
def joints_mse_loss(output, target, target_weight=None, use_target_weight=True):
    """output, target: (B, J, L); target_weight: (B, J, 1). Returns scalar f32."""
    B, J, L = output.shape
    BJ = B * J

    # Row-separable loss: flatten to (B*J, L) -- a free, contiguous reshape.
    pred = output.reshape(BJ, L)
    gt = target.reshape(BJ, L)

    n_streams = 3 if use_target_weight else 2
    TR = _pick_tile_rows(BJ, L * 4, n_streams)
    rows = pl.cdiv(BJ, TR) * TR
    pad = rows - BJ
    if pad:
        # Zero-padded rows contribute exactly 0 to the sum of squared diffs.
        pred = jnp.pad(pred, ((0, pad), (0, 0)))
        gt = jnp.pad(gt, ((0, pad), (0, 0)))
    num_tiles = rows // TR

    row_spec = pl.BlockSpec((TR, L), lambda i: (i, 0))
    out_spec = pl.BlockSpec((1, 1), lambda i: (i, 0))

    if use_target_weight:
        w = target_weight.reshape(BJ, 1)
        if pad:
            w = jnp.pad(w, ((0, pad), (0, 0)))
        kernel = _mse_weighted_kernel
        in_specs = [row_spec, row_spec, pl.BlockSpec((TR, 1), lambda i: (i, 0))]
        args = (pred, gt, w)
    else:
        kernel = _mse_kernel
        in_specs = [row_spec, row_spec]
        args = (pred, gt)

    partials = pl.pallas_call(
        kernel,
        out_shape=jax.ShapeDtypeStruct((num_tiles, 1), jnp.float32),
        grid_spec=pltpu.PrefetchScalarGridSpec(
            num_scalar_prefetch=0,
            grid=(num_tiles,),
            in_specs=in_specs,
            out_specs=out_spec,
        ),
        compiler_params=pltpu.CompilerParams(
            # Each tile writes an independent partial -> parallel axis (both v7x TCs).
            dimension_semantics=("parallel",),
        ),
    )(*args)

    return jnp.sum(partials) / J


def _reference_loss(output, target, target_weight, use_target_weight=True):
    """Pure-JAX reference mirroring the PyTorch forward (MSELoss reduction='sum')."""
    B, J, L = output.shape
    total = jnp.float32(0.0)
    for idx in range(J):
        hm_pred = output[:, idx, :]
        hm_gt = target[:, idx, :]
        if use_target_weight:
            wj = target_weight[:, idx]            # (B, 1)
            hm_pred = hm_pred * wj
            hm_gt = hm_gt * wj
        total = total + jnp.sum((hm_pred - hm_gt) ** 2)
    return total / J


if __name__ == "__main__":
    key = jax.random.PRNGKey(0)
    k1, k2, k3 = jax.random.split(key, 3)

    # B=2 samples, J=4 joints, L=256 (= 16x16 heatmap flattened per joint)
    B, J, L = 2, 4, 256
    output = jax.random.normal(k1, (B, J, L), dtype=jnp.float32)
    target = jax.random.normal(k2, (B, J, L), dtype=jnp.float32)
    target_weight = jax.random.uniform(k3, (B, J, 1), dtype=jnp.float32)

    # weighted path
    loss_w = joints_mse_loss(output, target, target_weight, use_target_weight=True)
    loss_w = jax.block_until_ready(loss_w)
    ref_w = _reference_loss(output, target, target_weight, use_target_weight=True)
    if not jnp.allclose(loss_w, ref_w, rtol=1e-5, atol=1e-5):
        raise AssertionError(f"weighted: pallas {loss_w} != reference {ref_w}")

    # unweighted path (no weight stream, no ones array)
    loss_nw = joints_mse_loss(output, target, None, use_target_weight=False)
    loss_nw = jax.block_until_ready(loss_nw)
    ref_nw = _reference_loss(output, target, target_weight, use_target_weight=False)
    if not jnp.allclose(loss_nw, ref_nw, rtol=1e-5, atol=1e-5):
        raise AssertionError(f"unweighted: pallas {loss_nw} != reference {ref_nw}")

    print("KERNEL_OK")
</pallas_src>

<mosaic_0001>
module attributes {stable_mosaic.version = 11 : i64} {
  func.func @_mse_weighted_kernel(%arg0: i32, %arg1: memref<8x256xf32, #tpu.memory_space<vmem>>, %arg2: memref<8x256xf32, #tpu.memory_space<vmem>>, %arg3: memref<8x1xf32, #tpu.memory_space<vmem>>, %arg4: memref<1x1xf32, #tpu.memory_space<vmem>>) attributes {dimension_semantics = [#tpu.dimension_semantics<parallel>], iteration_bounds = array<i64: 1>, scalar_prefetch = 0 : i64, scratch_operands = 0 : i64, tpu.core_type = #tpu.core_type<tc>, window_params = [{transform_indices = @transform_0, window_bounds = array<i64: 8, 256>}, {transform_indices = @transform_1, window_bounds = array<i64: 8, 256>}, {transform_indices = @transform_2, window_bounds = array<i64: 8, 1>}, {transform_indices = @transform_3, window_bounds = array<i64: 1, 1>}]} {
    %c0 = arith.constant 0 : index
    %c0_0 = arith.constant 0 : index
    %0 = vector.load %arg1[%c0, %c0_0] : memref<8x256xf32, #tpu.memory_space<vmem>>, vector<8x256xf32>
    %c0_1 = arith.constant 0 : index
    %c0_2 = arith.constant 0 : index
    %1 = vector.load %arg2[%c0_1, %c0_2] : memref<8x256xf32, #tpu.memory_space<vmem>>, vector<8x256xf32>
    %2 = arith.subf %0, %1 : vector<8x256xf32>
    %c0_3 = arith.constant 0 : index
    %c0_4 = arith.constant 0 : index
    %3 = vector.load %arg3[%c0_3, %c0_4] : memref<8x1xf32, #tpu.memory_space<vmem>>, vector<8x1xf32>
    %4 = vector.broadcast %3 : vector<8x1xf32> to vector<8x256xf32>
    %5 = arith.mulf %2, %4 : vector<8x256xf32>
    %6 = arith.mulf %5, %5 : vector<8x256xf32>
    %7 = vector.shape_cast %6 : vector<8x256xf32> to vector<1x8x256xf32>
    %cst = arith.constant dense<0.000000e+00> : vector<1xf32>
    %8 = vector.multi_reduction <add>, %7, %cst [1, 2] : vector<1x8x256xf32> to vector<1xf32>
    %9 = vector.shape_cast %8 : vector<1xf32> to vector<1x1x1xf32>
    %10 = vector.extract %9[0, 0, 0] : f32 from vector<1x1x1xf32>
    %11 = vector.broadcast %10 : f32 to vector<1x1xf32>
    %c0_5 = arith.constant 0 : index
    %c0_6 = arith.constant 0 : index
    %12 = vector.load %arg4[%c0_5, %c0_6] : memref<1x1xf32, #tpu.memory_space<vmem>>, vector<1x1xf32>
    tpu.vector_store %arg4[%c0_5, %c0_6], %11 {strides = array<i32>} : memref<1x1xf32, #tpu.memory_space<vmem>>, vector<1x1xf32>,
    return
  }
  func.func @transform_0(%arg0: i32) -> (i32, i32) {
    %c0_i32 = arith.constant 0 : i32
    %c0_i32_0 = arith.constant 0 : i32
    return %arg0, %c0_i32 : i32, i32
  }
  func.func @transform_1(%arg0: i32) -> (i32, i32) {
    %c0_i32 = arith.constant 0 : i32
    %c0_i32_0 = arith.constant 0 : i32
    return %arg0, %c0_i32 : i32, i32
  }
  func.func @transform_2(%arg0: i32) -> (i32, i32) {
    %c0_i32 = arith.constant 0 : i32
    %c0_i32_0 = arith.constant 0 : i32
    return %arg0, %c0_i32 : i32, i32
  }
  func.func @transform_3(%arg0: i32) -> (i32, i32) {
    %c0_i32 = arith.constant 0 : i32
    %c0_i32_0 = arith.constant 0 : i32
    return %arg0, %c0_i32 : i32, i32
  }
}

</mosaic_0001>

<bundles_post_ra>
// kernel: joints_mse_loss.1
= control target key start
LH: loop header
LB: loop body
LE: loop exit
PB: predicated region body
PF: predicated region fallthrough
CT: control target
= control target key end

     0   :  { %v87_v1 = vmov 0   ;;  %s136_s0 = inlined_call_operand.vmem [shape: f32[8,256], index: 0, kind: input, shape index: {}]   ;;  %s137_s1 = inlined_call_operand.vmem [shape: f32[8,256], index: 1, kind: input, shape index: {}]   ;;  %s138_s2 = inlined_call_operand.vmem [shape: f32[8,1], index: 2, kind: input, shape index: {}]   ;;  %s139_s3 = inlined_call_operand.hbm [shape: f32[1,1], index: 3, kind: output, shape index: {}]  }
   0x1   :  { %v21_v0 = vld [vmem:[%s138_s2] sm:$0xff]  ;;  %62 = vset.pattern.permute.xlu0 %v87_v1 }
   0x2   :  { %8 = vsyncpa [#allocation3], 0  ;;  %24 = vperm.xlu0 %62, %v21_v0   ;;  %v15_v2 = vld [vmem:[%s136_s0] sm:$0xff]  ;;  %v16_v3 = vld [vmem:[%s136_s0 + $0x8] sm:$0xff]  ;;  %s88_s0 = smov [#allocation2]   ;;  %vm42_vm0 = vcmask 0  }
   0x3   :  { %v17_v4 = vld [vmem:[%s137_s1] sm:$0xff]  ;;  %v18_v5 = vld [vmem:[%s137_s1 + $0x8] sm:$0xff]  ;;  %s50_s2 = sshll.u32 %s88_s0, 4  ;;  %s51_s2 = int_to_ptr.vmem [resolvable:$true] %s50_s2 }
   0x4   :  { %v19_v6 = vsub.f32 %v15_v2, %v17_v4  ;;  %v20_v7 = vsub.f32 %v16_v3, %v18_v5  ;;  %s63_s22 = scalar_lea.vmem %s51_s2, 16  ;;  %s67_s23 = scalar_lea.vmem %s51_s2, 32 }
   0x5   :  { %p64_p0 = scmp.ne.s32.totalorder %s51_s2, %s63_s22  ;;  %p68_p1 = scmp.lt.s32.totalorder %s51_s2, %s51_s2 }
   0x6   :  { %p69_p2 = scmp.lt.s32.totalorder %s67_s23, %s63_s22 }
   0x8   :  { %p70_p3 = por %p69_p2, %p68_p1 }
   0xa   :  { %p71_p4 = pnand %p70_p3, %p64_p0 }
  0x81   :  { %v25_v8 = vpop.permute.xlu0 %24 }
  0x82   :  { %v27_v9 = vmul.f32 %v25_v8, %v19_v6  ;;  %v28_v10 = vmul.f32 %v25_v8, %v20_v7 }
  0x84   :  { %v29_v11 = vmul.f32 %v27_v9, %v27_v9  ;;  %v30_v12 = vmul.f32 %v28_v10, %v28_v10 }
  0x86   :  { %v31_v13 = vadd.f32 %v30_v12, %v29_v11 }
  0x88   :  { %32 = vadd.xlane.f32.xlu0 %v31_v13 }
 0x115   :  { %v33_v14 = vpop.xlane.xlu0 %32 }
 0x116   :  { %v34_v15 = vrot.slane %v33_v14, 4 }
 0x118   :  { %v35_v16 = vadd.f32 %v34_v15, %v33_v14 }
 0x11a   :  { %v36_v17 = vrot.slane %v35_v16, 2 }
 0x11c   :  { %v37_v18 = vadd.f32 %v36_v17, %v35_v16 }
 0x11e   :  { %v38_v19 = vrot.slane %v37_v18, 1 }
 0x120   :  { %v39_v20 = vadd.f32 %v38_v19, %v37_v18 }
 0x122   :  { %58 = vpush %v39_v20 }
 0x153   :  { %s59_s1 = spop %58 }
 0x154   :  { %v41_v21 = vstv %s59_s1 }
 0x155   :  { %43 = vst.msk [vmem:[#allocation2] sm:$0x1] %vm42_vm0, %v41_v21 }
 0x156   :  { %74 = shalt.err (!%p71_p4)
}
 0x157   :  { %s75_s26 = scalar_lea.hbm %s139_s3, 16 }
 0x158   :  { %p76_p5 = scmp.ne.s32.totalorder %s139_s3, %s75_s26  ;;  %p79_p6 = scmp.lt.u32.totalorder %s75_s26, %s139_s3 }
 0x15a   :  { %p81_p7 = pnand %p79_p6, %p76_p5 }
 0x15c   :  { %84 = shalt.err (!%p81_p7)
}
 0x15d   :  { %53 = dma.vmem_to_hbm [thread:$0]  %s51_s2, 16, %s139_s3, [#allocation3]  }
 0x15e   :  { %85 = dma.done.wait [#allocation3], 16  }
 0x15f   :  { %86 = vsyncadd [#allocation3], 4294967280 }
 0x160   :  { %57 = vsyncpa [#allocation3], 1 }

</bundles_post_ra>
